<compile_context>
chip_gen: v7x
topology: tpu7x:2x2x1
jax: 0.10.0
libtpu: 0.0.40
codegen_flags: <defaults>
</compile_context>

<pallas_src>
import functools

import jax
import jax.numpy as jnp
from jax.experimental import pallas as pl
from jax.experimental.pallas import tpu as pltpu

_NEG_INF = -1e30  # finite "minus infinity" for padded logit columns


def _round_up(x, m):
    return ((x + m - 1) // m) * m


def _cdiv(a, b):
    return (a + b - 1) // b


def _device_kind():
    try:
        return jax.devices()[0].device_kind.lower()
    except Exception:
        return ""


def _discriminator_kernel(x_ref, w1_ref, b1_ref, w2_ref, b2_ref,
                          rep_ref, logits_ref, probs_ref):
    # TODO(synk): nn.Dropout is stochastic in train mode; this kernel implements the
    # eval-mode forward (dropout == identity), matching inference semantics.

    # Hidden layer: Linear + LeakyReLU(0.2).  Inputs arrive already in the matmul dtype
    # (cast in the wrapper); accumulation and all elementwise math stay f32.
    h = jnp.dot(x_ref[...], w1_ref[...], preferred_element_type=jnp.float32) + b1_ref[...]
    rep = jnp.maximum(h, 0.2 * h)                      # LeakyReLU(0.2): one VPU op
    rep_ref[...] = rep.astype(rep_ref.dtype)

    # Logit head (lane-padded; padded logit columns carry a -1e30 bias -> softmax 0).
    logits = jnp.dot(rep.astype(w2_ref.dtype), w2_ref[...],
                     preferred_element_type=jnp.float32) + b2_ref[...]
    logits_ref[...] = logits.astype(logits_ref.dtype)

    # Numerically stable softmax; the divide runs on the (otherwise idle) EUP.
    m = jnp.max(logits, axis=-1, keepdims=True)
    e = jnp.exp(logits - m)
    denom = jnp.sum(e, axis=-1, keepdims=True)
    probs_ref[...] = (e * pl.reciprocal(denom, approx=True)).astype(probs_ref.dtype)


@functools.partial(jax.jit, static_argnames=("tile_b", "use_bf16_matmul", "out_dtype"))
def discriminator_forward(x, w1, b1, w2, b2, *, tile_b=None,
                          use_bf16_matmul=False, out_dtype=jnp.float32):
    """x: (B, D_in); w1: (D_in, H); b1: (1, H); w2: (H, K); b2: (1, K).

    Returns (last_rep (B, H), logits (B, K), probs (B, K)), matching the PyTorch module.
    """
    B, D_in = x.shape
    H = w1.shape[1]
    K = w2.shape[1]

    kind = _device_kind()
    is_v7 = "v7" in kind

    # Lane-dense padded feature widths.  Hidden width padded to the 256-wide MXU N-tile
    # (v6e/v7x) when it is big enough to matter; logit width padded to 128 lanes.
    Hp = _round_up(H, 256) if H > 128 else _round_up(H, 128)
    Kp = _round_up(K, 128)

    # Batch tile: multiple of 8 sublanes; cap 1024 (v5e/v6e, 128 MiB VMEM) or 512
    # (v7x, 64 MiB VMEM).  Force >= 2 grid steps when the batch allows it so the input
    # DMA / writeback pipeline and (on v7x) both TensorCores get a share of the batch.
    if tile_b is None:
        cap = 512 if is_v7 else 1024
        tile_b = min(_round_up(B, 8), cap)
        if B >= 16 and _round_up(B, tile_b) // tile_b < 2:
            tile_b = _round_up(_cdiv(B, 2), 8)
    B_pad = _round_up(B, tile_b)

    matmul_dtype = jnp.bfloat16 if use_bf16_matmul else jnp.float32

    # Pad (and, for the MXU operands, cast) in the wrapper.  Zero padding is exact for
    # x/w1/b1/w2 (padded hidden units produce rep == 0 and contribute nothing); padded
    # logit biases are -1e30 -> softmax 0.  Biases stay f32 (added post f32-accumulate).
    x_p = jnp.pad(x, ((0, B_pad - B), (0, 0))).astype(matmul_dtype)
    w1_p = jnp.pad(w1, ((0, 0), (0, Hp - H))).astype(matmul_dtype)
    b1_p = jnp.pad(b1, ((0, 0), (0, Hp - H)))
    w2_p = jnp.pad(w2, ((0, Hp - H), (0, Kp - K))).astype(matmul_dtype)
    b2_p = jnp.pad(b2, ((0, 0), (0, Kp - K)), constant_values=_NEG_INF)

    in_bytes = jnp.dtype(matmul_dtype).itemsize
    out_bytes = jnp.dtype(out_dtype).itemsize

    # Per-grid-step VMEM: double-buffered x tile and outputs, single-buffered weights.
    vmem_est = (2 * tile_b * D_in * in_bytes
                + (D_in * Hp + Hp * Kp) * in_bytes + (Hp + Kp) * 4
                + 2 * tile_b * (Hp + 2 * Kp) * out_bytes)
    vmem_cap = (64 << 20) if is_v7 else (128 << 20)
    vmem_limit = min(vmem_cap, max(32 << 20, (vmem_est * 3) // 2))

    cost = pl.CostEstimate(
        flops=2 * B_pad * (D_in * Hp + Hp * Kp),
        transcendentals=B_pad * (Kp + 1),              # exp + softmax reciprocal
        bytes_accessed=(B_pad * D_in * in_bytes
                        + (D_in * Hp + Hp * Kp) * in_bytes + (Hp + Kp) * 4
                        + B_pad * (Hp + 2 * Kp) * out_bytes),
    )

    # Constant-index operands: single-buffer them (default double-buffering only
    # doubles their VMEM footprint for zero overlap benefit).
    resident = dict(pipeline_mode=pl.Buffered(1))

    grid = (B_pad // tile_b,)
    rep_p, logits_p, probs_p = pl.pallas_call(
        _discriminator_kernel,
        out_shape=(
            jax.ShapeDtypeStruct((B_pad, Hp), out_dtype),   # last_rep (padded)
            jax.ShapeDtypeStruct((B_pad, Kp), out_dtype),   # logits   (padded)
            jax.ShapeDtypeStruct((B_pad, Kp), out_dtype),   # probs    (padded)
        ),
        grid=grid,
        in_specs=[
            pl.BlockSpec((tile_b, D_in), lambda i: (i, 0)),            # x: batch-tiled
            pl.BlockSpec((D_in, Hp), lambda i: (0, 0), **resident),    # w1: resident
            pl.BlockSpec((1, Hp), lambda i: (0, 0), **resident),       # b1: resident
            pl.BlockSpec((Hp, Kp), lambda i: (0, 0), **resident),      # w2: resident
            pl.BlockSpec((1, Kp), lambda i: (0, 0), **resident),       # b2: resident
        ],
        out_specs=(
            pl.BlockSpec((tile_b, Hp), lambda i: (i, 0)),
            pl.BlockSpec((tile_b, Kp), lambda i: (i, 0)),
            pl.BlockSpec((tile_b, Kp), lambda i: (i, 0)),
        ),
        compiler_params=pltpu.CompilerParams(
            dimension_semantics=("parallel",),          # shards batch tiles across TCs
            vmem_limit_bytes=int(vmem_limit),
        ),
        cost_estimate=cost,
    )(x_p, w1_p, b1_p, w2_p, b2_p)

    # Slice padding back off.
    return rep_p[:B, :H], logits_p[:B, :K], probs_p[:B, :K]


def _init_linear(key, fan_in, fan_out):
    """Deterministic init mimicking nn.Linear's uniform(-1/sqrt(fan_in), 1/sqrt(fan_in))."""
    kw, kb = jax.random.split(key)
    bound = 1.0 / (fan_in ** 0.5)
    w = jax.random.uniform(kw, (fan_in, fan_out), jnp.float32, -bound, bound)
    b = jax.random.uniform(kb, (1, fan_out), jnp.float32, -bound, bound)
    return w, b


def _reference(x, w1, b1, w2, b2):
    h = x @ w1 + b1
    rep = jnp.where(h > 0, h, 0.2 * h)
    logits = rep @ w2 + b2
    probs = jax.nn.softmax(logits, axis=-1)
    return rep, logits, probs


if __name__ == "__main__":
    # Small shapes consistent with the module: batch=8, input_size=32,
    # hidden_sizes=[32], num_labels=2  ->  logits/probs have num_labels+1 = 3 columns.
    B, D_IN, H, NUM_LABELS = 8, 32, 32, 2
    K = NUM_LABELS + 1

    key = jax.random.PRNGKey(0)
    kx, k1, k2 = jax.random.split(key, 3)

    x = jax.random.normal(kx, (B, D_IN), jnp.float32)
    w1, b1 = _init_linear(k1, D_IN, H)
    w2, b2 = _init_linear(k2, H, K)

    rep_r, logits_r, probs_r = _reference(x, w1, b1, w2, b2)

    # f32 path: exact parity with the PyTorch reference.
    rep, logits, probs = discriminator_forward(x, w1, b1, w2, b2)
    jax.block_until_ready((rep, logits, probs))
    assert rep.shape == (B, H) and logits.shape == (B, K) and probs.shape == (B, K)
    assert jnp.allclose(rep, rep_r, atol=1e-5, rtol=1e-5)
    assert jnp.allclose(logits, logits_r, atol=1e-5, rtol=1e-5)
    # probs uses the EUP approx reciprocal -> slightly looser tolerance.
    assert jnp.allclose(probs, probs_r, atol=1e-3, rtol=1e-3)

    # bf16-MXU path (production default on v6e/v7x): wrapper casts x/w1/w2 to bf16,
    # f32 accumulation + f32 elementwise preserved; looser tolerances apply.
    rep_b, logits_b, probs_b = discriminator_forward(
        x, w1, b1, w2, b2, use_bf16_matmul=True)
    jax.block_until_ready((rep_b, logits_b, probs_b))
    assert jnp.allclose(rep_b, rep_r, atol=5e-2, rtol=5e-2)
    assert jnp.allclose(logits_b, logits_r, atol=5e-2, rtol=5e-2)
    assert jnp.allclose(probs_b, probs_r, atol=2e-2, rtol=2e-2)

    print("KERNEL_OK")
</pallas_src>

<mosaic_0001>
module attributes {stable_mosaic.version = 11 : i64} {
  func.func @_discriminator_kernel(%arg0: i32, %arg1: memref<8x32xf32, #tpu.memory_space<vmem>>, %arg2: memref<32x128xf32, #tpu.memory_space<vmem>>, %arg3: memref<1x128xf32, #tpu.memory_space<vmem>>, %arg4: memref<128x128xf32, #tpu.memory_space<vmem>>, %arg5: memref<1x128xf32, #tpu.memory_space<vmem>>, %arg6: memref<8x128xf32, #tpu.memory_space<vmem>>, %arg7: memref<8x128xf32, #tpu.memory_space<vmem>>, %arg8: memref<8x128xf32, #tpu.memory_space<vmem>>) attributes {dimension_semantics = [#tpu.dimension_semantics<parallel>], iteration_bounds = array<i64: 1>, scalar_prefetch = 0 : i64, scratch_operands = 0 : i64, tpu.core_type = #tpu.core_type<tc>, window_params = [{transform_indices = @transform_0, window_bounds = array<i64: 8, 32>}, {pipeline_mode = #tpu.pipeline_mode<synchronous>, transform_indices = @transform_1, window_bounds = array<i64: 32, 128>}, {pipeline_mode = #tpu.pipeline_mode<synchronous>, transform_indices = @transform_2, window_bounds = array<i64: 1, 128>}, {pipeline_mode = #tpu.pipeline_mode<synchronous>, transform_indices = @transform_3, window_bounds = array<i64: 128, 128>}, {pipeline_mode = #tpu.pipeline_mode<synchronous>, transform_indices = @transform_4, window_bounds = array<i64: 1, 128>}, {transform_indices = @transform_5, window_bounds = array<i64: 8, 128>}, {transform_indices = @transform_6, window_bounds = array<i64: 8, 128>}, {transform_indices = @transform_7, window_bounds = array<i64: 8, 128>}]} {
    %c0 = arith.constant 0 : index
    %c0_0 = arith.constant 0 : index
    %0 = vector.load %arg1[%c0, %c0_0] : memref<8x32xf32, #tpu.memory_space<vmem>>, vector<8x32xf32>
    %c0_1 = arith.constant 0 : index
    %c0_2 = arith.constant 0 : index
    %1 = vector.load %arg2[%c0_1, %c0_2] : memref<32x128xf32, #tpu.memory_space<vmem>>, vector<32x128xf32>
    %cst = arith.constant dense<0.000000e+00> : vector<8x128xf32>
    %2 = tpu.matmul %0, %1, %cst {dimension_numbers = #tpu.dot_dimension_numbers<[1], [0], [0], [1], [0, 0, 1, 1], [], []>} : vector<8x32xf32>, vector<32x128xf32>, vector<8x128xf32> -> vector<8x128xf32>
    %c0_3 = arith.constant 0 : index
    %c0_4 = arith.constant 0 : index
    %3 = vector.load %arg3[%c0_3, %c0_4] : memref<1x128xf32, #tpu.memory_space<vmem>>, vector<1x128xf32>
    %4 = vector.broadcast %3 : vector<1x128xf32> to vector<8x128xf32>
    %5 = arith.addf %2, %4 : vector<8x128xf32>
    %cst_5 = arith.constant 2.000000e-01 : f32
    %6 = vector.broadcast %cst_5 : f32 to vector<8x128xf32>
    %7 = arith.mulf %6, %5 : vector<8x128xf32>
    %8 = arith.maximumf %5, %7 : vector<8x128xf32>
    %c0_6 = arith.constant 0 : index
    %c0_7 = arith.constant 0 : index
    %9 = vector.load %arg6[%c0_6, %c0_7] : memref<8x128xf32, #tpu.memory_space<vmem>>, vector<8x128xf32>
    tpu.vector_store %arg6[%c0_6, %c0_7], %8 {strides = array<i32>} : memref<8x128xf32, #tpu.memory_space<vmem>>, vector<8x128xf32>,
    %c0_8 = arith.constant 0 : index
    %c0_9 = arith.constant 0 : index
    %10 = vector.load %arg4[%c0_8, %c0_9] : memref<128x128xf32, #tpu.memory_space<vmem>>, vector<128x128xf32>
    %cst_10 = arith.constant dense<0.000000e+00> : vector<8x128xf32>
    %11 = tpu.matmul %8, %10, %cst_10 {dimension_numbers = #tpu.dot_dimension_numbers<[1], [0], [0], [1], [0, 0, 1, 1], [], []>} : vector<8x128xf32>, vector<128x128xf32>, vector<8x128xf32> -> vector<8x128xf32>
    %c0_11 = arith.constant 0 : index
    %c0_12 = arith.constant 0 : index
    %12 = vector.load %arg5[%c0_11, %c0_12] : memref<1x128xf32, #tpu.memory_space<vmem>>, vector<1x128xf32>
    %13 = vector.broadcast %12 : vector<1x128xf32> to vector<8x128xf32>
    %14 = arith.addf %11, %13 : vector<8x128xf32>
    %c0_13 = arith.constant 0 : index
    %c0_14 = arith.constant 0 : index
    %15 = vector.load %arg7[%c0_13, %c0_14] : memref<8x128xf32, #tpu.memory_space<vmem>>, vector<8x128xf32>
    tpu.vector_store %arg7[%c0_13, %c0_14], %14 {strides = array<i32>} : memref<8x128xf32, #tpu.memory_space<vmem>>, vector<8x128xf32>,
    %cst_15 = arith.constant dense<0xFF800000> : vector<8xf32>
    %16 = vector.multi_reduction <maximumf>, %14, %cst_15 [1] : vector<8x128xf32> to vector<8xf32>
    %17 = vector.shape_cast %16 : vector<8xf32> to vector<8x1xf32>
    %18 = vector.broadcast %17 : vector<8x1xf32> to vector<8x128xf32>
    %19 = arith.subf %14, %18 : vector<8x128xf32>
    %20 = math.exp %19 : vector<8x128xf32>
    %cst_16 = arith.constant dense<0.000000e+00> : vector<8xf32>
    %21 = vector.multi_reduction <add>, %20, %cst_16 [1] : vector<8x128xf32> to vector<8xf32>
    %22 = vector.shape_cast %21 : vector<8xf32> to vector<8x1xf32>
    %23 = tpu.reciprocal %22 {approx = true} : vector<8x1xf32> -> vector<8x1xf32>
    %24 = vector.broadcast %23 : vector<8x1xf32> to vector<8x128xf32>
    %25 = arith.mulf %20, %24 : vector<8x128xf32>
    %c0_17 = arith.constant 0 : index
    %c0_18 = arith.constant 0 : index
    %26 = vector.load %arg8[%c0_17, %c0_18] : memref<8x128xf32, #tpu.memory_space<vmem>>, vector<8x128xf32>
    tpu.vector_store %arg8[%c0_17, %c0_18], %25 {strides = array<i32>} : memref<8x128xf32, #tpu.memory_space<vmem>>, vector<8x128xf32>,
    return
  }
  func.func @transform_0(%arg0: i32) -> (i32, i32) {
    %c0_i32 = arith.constant 0 : i32
    %c0_i32_0 = arith.constant 0 : i32
    return %arg0, %c0_i32 : i32, i32
  }
  func.func @transform_1(%arg0: i32) -> (i32, i32) {
    %c0_i32 = arith.constant 0 : i32
    %c0_i32_0 = arith.constant 0 : i32
    %c0_i32_1 = arith.constant 0 : i32
    return %c0_i32, %c0_i32_0 : i32, i32
  }
  func.func @transform_2(%arg0: i32) -> (i32, i32) {
    %c0_i32 = arith.constant 0 : i32
    %c0_i32_0 = arith.constant 0 : i32
    %c0_i32_1 = arith.constant 0 : i32
    return %c0_i32, %c0_i32_0 : i32, i32
  }
  func.func @transform_3(%arg0: i32) -> (i32, i32) {
    %c0_i32 = arith.constant 0 : i32
    %c0_i32_0 = arith.constant 0 : i32
    %c0_i32_1 = arith.constant 0 : i32
    return %c0_i32, %c0_i32_0 : i32, i32
  }
  func.func @transform_4(%arg0: i32) -> (i32, i32) {
    %c0_i32 = arith.constant 0 : i32
    %c0_i32_0 = arith.constant 0 : i32
    %c0_i32_1 = arith.constant 0 : i32
    return %c0_i32, %c0_i32_0 : i32, i32
  }
  func.func @transform_5(%arg0: i32) -> (i32, i32) {
    %c0_i32 = arith.constant 0 : i32
    %c0_i32_0 = arith.constant 0 : i32
    return %arg0, %c0_i32 : i32, i32
  }
  func.func @transform_6(%arg0: i32) -> (i32, i32) {
    %c0_i32 = arith.constant 0 : i32
    %c0_i32_0 = arith.constant 0 : i32
    return %arg0, %c0_i32 : i32, i32
  }
  func.func @transform_7(%arg0: i32) -> (i32, i32) {
    %c0_i32 = arith.constant 0 : i32
    %c0_i32_0 = arith.constant 0 : i32
    return %arg0, %c0_i32 : i32, i32
  }
}

</mosaic_0001>

<bundles_post_ra>
// kernel: discriminator_forward.1
= control target key start
LH: loop header
LB: loop body
LE: loop exit
PB: predicated region body
PF: predicated region fallthrough
CT: control target
= control target key end

     0   :  { %v372_v3 = vmov 0.0|0.0   ;;  %vm373_vm0 = vmmov 0   ;;  %v374_v6 = vmov 0.0   ;;  %s503_s0 = inlined_call_operand.vmem [shape: f32[8,32], index: 0, kind: input, shape index: {}]   ;;  %s504_s1 = inlined_call_operand.vmem [shape: f32[32,128], index: 1, kind: input, shape index: {}]   ;;  %s505_s2 = inlined_call_operand.vmem [shape: f32[1,128], index: 2, kind: input, shape index: {}]   ;;  %s506_s3 = inlined_call_operand.vmem [shape: f32[128,128], index: 3, kind: input, shape index: {}]   ;;  %s507_s4 = inlined_call_operand.vmem [shape: f32[1,128], index: 4, kind: input, shape index: {}]   ;;  %s508_s5 = inlined_call_operand.hbm [shape: f32[8,128], index: 5, kind: output, shape index: {0}]   ;;  %s509_s6 = inlined_call_operand.vmem [shape: f32[8,128], index: 6, kind: output, shape index: {1}]   ;;  %s510_s7 = inlined_call_operand.vmem [shape: f32[8,128], index: 7, kind: output, shape index: {2}]  }
   0x1   :  { %v25_v0 = vld [vmem:[%s504_s1] sm:$0xff]  ;;  %v26_v1 = vld [vmem:[%s504_s1 + $0x8] sm:$0xff]  ;;  %v27_v2 = vld [vmem:[%s504_s1 + $0x10] sm:$0xff]  ;;  %310 = vmatprep.subr.bf16.mxu0 %v372_v3  ;;  %272 = vmatprep.mubr.msk.f32.mxu0 %vm373_vm0, %v374_v6 }
   0x2   :  { %v311_v4 = vpack.c.bf16 %v26_v1, %v25_v0  ;;  %v28_v5 = vld [vmem:[%s504_s1 + $0x18] sm:$0xff]  ;;  %v113_v7 = vld [vmem:[%s506_s3] sm:$0xff]  ;;  %316 = vmatprep.subr.bf16.mxu1 %v372_v3  ;;  %v114_v8 = vld [vmem:[%s506_s3 + $0x8] sm:$0xff]  ;;  %307 = vmatprep.mubr.msk.f32.mxu1 %vm373_vm0, %v374_v6 }
   0x3   :  { %v115_v9 = vld [vmem:[%s506_s3 + $0x10] sm:$0xff]  ;;  %v116_v10 = vld [vmem:[%s506_s3 + $0x18] sm:$0xff]  ;;  %v314_v11 = vpack.c.bf16 %v28_v5, %v27_v2  ;;  %v317_v12 = vpack.c.bf16 %v114_v8, %v113_v7  ;;  %v117_v14 = vld [vmem:[%s506_s3 + $0x20] sm:$0xff] }
   0x4   :  { %312 = vmatpush3.bf16.msra.mxu0 %v311_v4  ;;  %v320_v13 = vpack.c.bf16 %v116_v10, %v115_v9  ;;  %v118_v15 = vld [vmem:[%s506_s3 + $0x28] sm:$0xff] }
   0x5   :  { %313 = vmatprep.subr.bf16.mxu0 %v372_v3  ;;  %318 = vmatpush3.bf16.msra.mxu1 %v317_v12 }
   0x6   :  { %319 = vmatprep.subr.bf16.mxu1 %v372_v3 }
   0x7   :  { %13 = vsyncpa [#allocation3], 0  ;;  %v24_v16 = vld [vmem:[%s503_s0] sm:$0xff]  ;;  %vm36_vm1 = vcmask 261120   ;;  %v323_v17 = vpack.c.bf16 %v118_v15, %v117_v14  ;;  %v119_v18 = vld [vmem:[%s506_s3 + $0x30] sm:$0xff] }
   0x8   :  { %315 = vmatpush3.bf16.msra.mxu0 %v314_v11  ;;  %v120_v19 = vld [vmem:[%s506_s3 + $0x38] sm:$0xff]  ;;  %v121_v21 = vld [vmem:[%s506_s3 + $0x40] sm:$0xff]  ;;  %v122_v22 = vld [vmem:[%s506_s3 + $0x48] sm:$0xff] }
   0x9   :  { %321 = vmatpush3.bf16.msra.mxu1 %v320_v13  ;;  %v326_v20 = vpack.c.bf16 %v120_v19, %v119_v18  ;;  %v329_v23 = vpack.c.bf16 %v122_v22, %v121_v21  ;;  %v123_v24 = vld [vmem:[%s506_s3 + $0x50] sm:$0xff]  ;;  %v124_v25 = vld [vmem:[%s506_s3 + $0x58] sm:$0xff]  ;;  %v125_v27 = vld [vmem:[%s506_s3 + $0x60] sm:$0xff] }
   0xa   :  { %322 = vmatprep.subr.bf16.mxu1 %v372_v3  ;;  %v332_v26 = vpack.c.bf16 %v124_v25, %v123_v24  ;;  %v126_v28 = vld [vmem:[%s506_s3 + $0x68] sm:$0xff]  ;;  %v127_v30 = vld [vmem:[%s506_s3 + $0x70] sm:$0xff]  ;;  %v128_v31 = vld [vmem:[%s506_s3 + $0x78] sm:$0xff] }
   0xb   :  { %273 = vmatmul.mubr.msk.f32.vlgmr.msra.gmra.mrb[0].mxu0 %vm36_vm1, %v24_v16  ;;  %v335_v29 = vpack.c.bf16 %v126_v28, %v125_v27  ;;  %v338_v32 = vpack.c.bf16 %v128_v31, %v127_v30  ;;  %v239_v33 = vld [vmem:[%s505_s2] ss:$0 sm:$0xff]  ;;  %s375_s2 = smov [#allocation2]  }
   0xc   :  { %v241_v39 = vld [vmem:[%s507_s4] ss:$0 sm:$0xff]  ;;  %s223_s22 = sshll.u32 %s375_s2, 4  ;;  %s224_s22 = int_to_ptr.vmem [resolvable:$true] %s223_s22 }
   0xd   :  { %324 = vmatpush3.bf16.msra.mxu1 %v323_v17  ;;  %s348_s23 = scalar_lea.vmem %s224_s22, 128  ;;  %p353_p1 = scmp.lt.s32.totalorder %s224_s22, %s224_s22 }
   0xe   :  { %325 = vmatprep.subr.bf16.mxu1 %v372_v3  ;;  %p349_p0 = scmp.ne.s32.totalorder %s224_s22, %s348_s23  ;;  %p354_p2 = scmp.lt.s32.totalorder %s348_s23, %s348_s23 }
  0x10   :  { %p355_p3 = por %p354_p2, %p353_p1 }
  0x11   :  { %327 = vmatpush3.bf16.msra.mxu1 %v326_v20 }
  0x12   :  { %328 = vmatprep.subr.bf16.mxu1 %v372_v3  ;;  %p356_p4 = pnand %p355_p3, %p349_p0 }
  0x15   :  { %330 = vmatpush3.bf16.msra.mxu1 %v329_v23 }
  0x16   :  { %331 = vmatprep.subr.bf16.mxu1 %v372_v3 }
  0x19   :  { %333 = vmatpush3.bf16.msra.mxu1 %v332_v26 }
  0x1a   :  { %334 = vmatprep.subr.bf16.mxu1 %v372_v3 }
  0x1d   :  { %336 = vmatpush3.bf16.msra.mxu1 %v335_v29 }
  0x1e   :  { %337 = vmatprep.subr.bf16.mxu1 %v372_v3 }
  0x21   :  { %339 = vmatpush3.bf16.msra.mxu1 %v338_v32 }
  0xde   :  { %v106_v34 = vpop.f32.mrb[0].mxu0 }
  0xdf   :  { %v107_v35 = vadd.f32 %v239_v33, %v106_v34  ;;  %v274_v36 = vpop.f32.mrb[1].mxu0 }
  0xe1   :  { %v110_v37 = vmul.f32 0.2, %v107_v35 }
  0xe3   :  { %v111_v38 = vmax.f32 %v107_v35, %v110_v37 }
  0xe5   :  { %112 = vst [vmem:[#allocation2] sm:$0xff] %v111_v38  ;;  %308 = vmatmul.mubr.f32.vlgmr.msra.gmra.mrb[0].mxu1 %v111_v38 }
 0x1b8   :  { %v202_v40 = vpop.f32.mrb[0].mxu1 }
 0x1b9   :  { %v203_v41 = vadd.f32 %v241_v39, %v202_v40  ;;  %v309_v42 = vpop.f32.mrb[1].mxu1 }
 0x1bb   :  { %206 = vst [vmem:[%s509_s6] sm:$0xff] %v203_v41  ;;  %207 = vmax.xlane.f32.xlu0 %v203_v41 }
 0x248   :  { %v208_v43 = vpop.xlane.xlu0 %207 }
 0x249   :  { %v209_v44 = vsub.f32 %v203_v41, %v208_v43 }
 0x24b   :  { %v210_v45 = vmul.f32 1.442695, %v209_v44 }
 0x24d   :  { %344 = vpow2.f32 %v210_v45 }
 0x257   :  { %v345_v46 = vpop.eup %344 }
 0x258   :  { %212 = vadd.xlane.f32.xlu0 %v345_v46 }
 0x259   :  { %359 = shalt.err (!%p356_p4)
}
 0x25a   :  { %s360_s6 = scalar_lea.hbm %s508_s5, 128 }
 0x25b   :  { %p361_p5 = scmp.ne.s32.totalorder %s508_s5, %s360_s6  ;;  %p364_p6 = scmp.lt.u32.totalorder %s360_s6, %s508_s5 }
 0x25d   :  { %p366_p7 = pnand %p364_p6, %p361_p5 }
 0x25f   :  { %369 = shalt.err (!%p366_p7)
}
 0x260   :  { %226 = dma.vmem_to_hbm [thread:$0]  %s224_s22, 128, %s508_s5, [#allocation3]  }
 0x2e5   :  { %v213_v47 = vpop.xlane.xlu0 %212 }
 0x2e6   :  { %346 = vrcp.f32 %v213_v47 }
 0x2f0   :  { %v347_v48 = vpop.eup %346 }
 0x2f1   :  { %v215_v49 = vmul.f32 %v347_v48, %v345_v46 }
 0x2f3   :  { %216 = vst [vmem:[%s510_s7] sm:$0xff] %v215_v49 }
 0x2f4   :  { %370 = dma.done.wait [#allocation3], 128  }
 0x2f5   :  { %371 = vsyncadd [#allocation3], 4294967168 }
 0x2f6   :  { %238 = vsyncpa [#allocation3], 1 }

</bundles_post_ra>
